<compile_context>
chip_gen: v7x
topology: tpu7x:2x2x1
jax: 0.10.0
libtpu: 0.0.40
codegen_flags: <defaults>
</compile_context>

<pallas_src>
import functools

import jax
import jax.numpy as jnp
from jax.experimental import pallas as pl
from jax.experimental.pallas import tpu as pltpu


def discriminator_kernel(x_ref, w1_ref, b1_ref, w2_ref, b2_ref, w3_ref, b3_ref,
                         o_ref):
    # Layer 1: Linear (bf16 matmul, f32 accumulate) + LeakyReLU(0.2) in f32.
    x = x_ref[...].astype(jnp.bfloat16)
    h1 = jnp.dot(x, w1_ref[...],
                 preferred_element_type=jnp.float32) + b1_ref[...]
    h1 = jnp.where(h1 > 0.0, h1, 0.2 * h1)

    # Layer 2: Linear + LeakyReLU(0.2).
    h2 = jnp.dot(h1.astype(jnp.bfloat16), w2_ref[...],
                 preferred_element_type=jnp.float32) + b2_ref[...]
    h2 = jnp.where(h2 > 0.0, h2, 0.2 * h2)

    # Layer 3: Linear + Sigmoid (f32 elementwise; EUP exp).
    h3 = jnp.dot(h2.astype(jnp.bfloat16), w3_ref[...],
                 preferred_element_type=jnp.float32) + b3_ref[...]
    o_ref[...] = (1.0 / (1.0 + jnp.exp(-h3))).astype(o_ref.dtype)


@functools.partial(jax.jit, static_argnames=("batch_tile",))
def discriminator_forward(img, params, *, batch_tile=None):
    """img: [B, image_dim] float32.  params: dict of [in,out] weights, [1,out] biases."""
    B, image_dim = img.shape
    w1, b1 = params["w1"], params["b1"]
    w2, b2 = params["w2"], params["b2"]
    w3, b3 = params["w3"], params["b3"]
    L0 = w1.shape[1]
    L1 = w2.shape[1]

    # Large batch tile: fills MXU M-dim and amortizes per-grid-step overhead.
    # bf16 activations need batch_tile % 16 == 0 when tiling (128 satisfies it).
    if batch_tile is None:
        batch_tile = 128 if B % 128 == 0 else B
    assert B % batch_tile == 0, "pad the batch to a multiple of batch_tile"
    grid = (B // batch_tile,)

    # Pre-cast weights to bf16 (halves weight DMA + VMEM); biases stay f32
    # because the bias-add / LeakyReLU / sigmoid path runs in f32.
    w1c = w1.astype(jnp.bfloat16)
    w2c = w2.astype(jnp.bfloat16)
    w3c = w3.astype(jnp.bfloat16)

    # Weights/biases: single full blocks, resident in VMEM across batch tiles.
    in_specs = [
        pl.BlockSpec((batch_tile, image_dim), lambda i: (i, 0)),   # img tile
        pl.BlockSpec((image_dim, L0), lambda i: (0, 0)),           # w1
        pl.BlockSpec((1, L0), lambda i: (0, 0)),                   # b1
        pl.BlockSpec((L0, L1), lambda i: (0, 0)),                  # w2
        pl.BlockSpec((1, L1), lambda i: (0, 0)),                   # b2
        pl.BlockSpec((L1, 1), lambda i: (0, 0)),                   # w3
        pl.BlockSpec((1, 1), lambda i: (0, 0)),                    # b3
    ]
    out_spec = pl.BlockSpec((batch_tile, 1), lambda i: (i, 0))

    flops = 2 * B * (image_dim * L0 + L0 * L1 + L1 * 1)
    transcendentals = B * 1  # sigmoid exp
    bytes_accessed = (
        B * image_dim * 4 + B * 1 * 4 +                # img + output (f32)
        (image_dim * L0 + L0 * L1 + L1 * 1) * 2 +      # bf16 weights
        (L0 + L1 + 1) * 4                              # f32 biases
    )

    return pl.pallas_call(
        discriminator_kernel,
        out_shape=jax.ShapeDtypeStruct((B, 1), jnp.float32),
        grid_spec=pltpu.PrefetchScalarGridSpec(
            num_scalar_prefetch=0,
            grid=grid,
            in_specs=in_specs,
            out_specs=out_spec,
        ),
        compiler_params=pltpu.CompilerParams(
            dimension_semantics=("parallel",)),
        cost_estimate=pl.CostEstimate(
            flops=flops,
            transcendentals=transcendentals,
            bytes_accessed=bytes_accessed),
    )(img, w1c, b1, w2c, b2, w3c, b3)


def init_discriminator_params(key, image_dim, layers):
    """PyTorch nn.Linear default init: U(-1/sqrt(fan_in), 1/sqrt(fan_in)).
    Weights stored transposed as [in, out]; biases as [1, out]."""
    dims = [(image_dim, layers[0]), (layers[0], layers[1]), (layers[1], 1)]
    params = {}
    keys = jax.random.split(key, 2 * len(dims))
    for idx, (fan_in, fan_out) in enumerate(dims):
        bound = 1.0 / jnp.sqrt(jnp.float32(fan_in))
        w = jax.random.uniform(keys[2 * idx], (fan_in, fan_out),
                               jnp.float32, -bound, bound)
        b = jax.random.uniform(keys[2 * idx + 1], (1, fan_out),
                               jnp.float32, -bound, bound)
        params[f"w{idx + 1}"] = w
        params[f"b{idx + 1}"] = b
    return params


def discriminator_reference(img, params):
    """Pure-JAX f32 reference of the PyTorch forward pass."""
    h = img @ params["w1"] + params["b1"]
    h = jnp.where(h > 0.0, h, 0.2 * h)
    h = h @ params["w2"] + params["b2"]
    h = jnp.where(h > 0.0, h, 0.2 * h)
    logits = h @ params["w3"] + params["b3"]
    return jax.nn.sigmoid(logits)


if __name__ == "__main__":
    # Small but lane-dense shapes consistent with forward(img: [B, image_dim]).
    image_dim = 256
    layers = [128, 128]
    B = 256  # -> grid=(2,) with batch_tile=128: both v7x TCs busy, MXU M filled.

    key = jax.random.PRNGKey(0)
    k_params, k_img = jax.random.split(key)
    params = init_discriminator_params(k_params, image_dim, layers)
    img = jax.random.normal(k_img, (B, image_dim), dtype=jnp.float32)

    out = discriminator_forward(img, params)
    out = jax.block_until_ready(out)

    ref = discriminator_reference(img, params)
    assert out.shape == (B, 1)
    # bf16 matmul inputs -> loosened tolerance vs the f32 reference.
    assert jnp.allclose(out, ref, atol=1e-2, rtol=1e-2), "mismatch vs reference"

    print("KERNEL_OK")
</pallas_src>

<mosaic_0001>
module attributes {stable_mosaic.version = 11 : i64} {
  func.func @discriminator_kernel(%arg0: i32, %arg1: memref<128x256xf32, #tpu.memory_space<vmem>>, %arg2: memref<256x128xbf16, #tpu.memory_space<vmem>>, %arg3: memref<1x128xf32, #tpu.memory_space<vmem>>, %arg4: memref<128x128xbf16, #tpu.memory_space<vmem>>, %arg5: memref<1x128xf32, #tpu.memory_space<vmem>>, %arg6: memref<128x1xbf16, #tpu.memory_space<vmem>>, %arg7: memref<1x1xf32, #tpu.memory_space<vmem>>, %arg8: memref<128x1xf32, #tpu.memory_space<vmem>>) attributes {dimension_semantics = [#tpu.dimension_semantics<parallel>], iteration_bounds = array<i64: 2>, scalar_prefetch = 0 : i64, scratch_operands = 0 : i64, tpu.core_type = #tpu.core_type<tc>, window_params = [{transform_indices = @transform_0, window_bounds = array<i64: 128, 256>}, {pipeline_mode = #tpu.pipeline_mode<synchronous>, transform_indices = @transform_1, window_bounds = array<i64: 256, 128>}, {pipeline_mode = #tpu.pipeline_mode<synchronous>, transform_indices = @transform_2, window_bounds = array<i64: 1, 128>}, {pipeline_mode = #tpu.pipeline_mode<synchronous>, transform_indices = @transform_3, window_bounds = array<i64: 128, 128>}, {pipeline_mode = #tpu.pipeline_mode<synchronous>, transform_indices = @transform_4, window_bounds = array<i64: 1, 128>}, {pipeline_mode = #tpu.pipeline_mode<synchronous>, transform_indices = @transform_5, window_bounds = array<i64: 128, 1>}, {pipeline_mode = #tpu.pipeline_mode<synchronous>, transform_indices = @transform_6, window_bounds = array<i64: 1, 1>}, {transform_indices = @transform_7, window_bounds = array<i64: 128, 1>}]} {
    %c0 = arith.constant 0 : index
    %c0_0 = arith.constant 0 : index
    %0 = vector.load %arg1[%c0, %c0_0] : memref<128x256xf32, #tpu.memory_space<vmem>>, vector<128x256xf32>
    %1 = arith.truncf %0 : vector<128x256xf32> to vector<128x256xbf16>
    %c0_1 = arith.constant 0 : index
    %c0_2 = arith.constant 0 : index
    %2 = vector.load %arg2[%c0_1, %c0_2] : memref<256x128xbf16, #tpu.memory_space<vmem>>, vector<256x128xbf16>
    %cst = arith.constant dense<0.000000e+00> : vector<128x128xf32>
    %3 = tpu.matmul %1, %2, %cst {dimension_numbers = #tpu.dot_dimension_numbers<[1], [0], [0], [1], [0, 0, 1, 1], [], []>} : vector<128x256xbf16>, vector<256x128xbf16>, vector<128x128xf32> -> vector<128x128xf32>
    %c0_3 = arith.constant 0 : index
    %c0_4 = arith.constant 0 : index
    %4 = vector.load %arg3[%c0_3, %c0_4] : memref<1x128xf32, #tpu.memory_space<vmem>>, vector<1x128xf32>
    %5 = vector.broadcast %4 : vector<1x128xf32> to vector<128x128xf32>
    %6 = arith.addf %3, %5 : vector<128x128xf32>
    %cst_5 = arith.constant 0.000000e+00 : f32
    %7 = vector.broadcast %cst_5 : f32 to vector<128x128xf32>
    %8 = arith.cmpf ogt, %6, %7 : vector<128x128xf32>
    %cst_6 = arith.constant 2.000000e-01 : f32
    %9 = vector.broadcast %cst_6 : f32 to vector<128x128xf32>
    %10 = arith.mulf %9, %6 : vector<128x128xf32>
    %11 = arith.select %8, %6, %10 : vector<128x128xi1>, vector<128x128xf32>
    %12 = arith.truncf %11 : vector<128x128xf32> to vector<128x128xbf16>
    %c0_7 = arith.constant 0 : index
    %c0_8 = arith.constant 0 : index
    %13 = vector.load %arg4[%c0_7, %c0_8] : memref<128x128xbf16, #tpu.memory_space<vmem>>, vector<128x128xbf16>
    %cst_9 = arith.constant dense<0.000000e+00> : vector<128x128xf32>
    %14 = tpu.matmul %12, %13, %cst_9 {dimension_numbers = #tpu.dot_dimension_numbers<[1], [0], [0], [1], [0, 0, 1, 1], [], []>} : vector<128x128xbf16>, vector<128x128xbf16>, vector<128x128xf32> -> vector<128x128xf32>
    %c0_10 = arith.constant 0 : index
    %c0_11 = arith.constant 0 : index
    %15 = vector.load %arg5[%c0_10, %c0_11] : memref<1x128xf32, #tpu.memory_space<vmem>>, vector<1x128xf32>
    %16 = vector.broadcast %15 : vector<1x128xf32> to vector<128x128xf32>
    %17 = arith.addf %14, %16 : vector<128x128xf32>
    %cst_12 = arith.constant 0.000000e+00 : f32
    %18 = vector.broadcast %cst_12 : f32 to vector<128x128xf32>
    %19 = arith.cmpf ogt, %17, %18 : vector<128x128xf32>
    %cst_13 = arith.constant 2.000000e-01 : f32
    %20 = vector.broadcast %cst_13 : f32 to vector<128x128xf32>
    %21 = arith.mulf %20, %17 : vector<128x128xf32>
    %22 = arith.select %19, %17, %21 : vector<128x128xi1>, vector<128x128xf32>
    %23 = arith.truncf %22 : vector<128x128xf32> to vector<128x128xbf16>
    %c0_14 = arith.constant 0 : index
    %c0_15 = arith.constant 0 : index
    %24 = vector.load %arg6[%c0_14, %c0_15] : memref<128x1xbf16, #tpu.memory_space<vmem>>, vector<128x1xbf16>
    %cst_16 = arith.constant dense<0.000000e+00> : vector<128x1xf32>
    %25 = tpu.matmul %23, %24, %cst_16 {dimension_numbers = #tpu.dot_dimension_numbers<[1], [0], [0], [1], [0, 0, 1, 1], [], []>} : vector<128x128xbf16>, vector<128x1xbf16>, vector<128x1xf32> -> vector<128x1xf32>
    %c0_17 = arith.constant 0 : index
    %c0_18 = arith.constant 0 : index
    %26 = vector.load %arg7[%c0_17, %c0_18] : memref<1x1xf32, #tpu.memory_space<vmem>>, vector<1x1xf32>
    %27 = vector.broadcast %26 : vector<1x1xf32> to vector<128x1xf32>
    %28 = arith.addf %25, %27 : vector<128x1xf32>
    %cst_19 = arith.constant 0.000000e+00 : f32
    %29 = vector.broadcast %cst_19 : f32 to vector<128x1xf32>
    %30 = arith.subf %29, %28 : vector<128x1xf32>
    %31 = math.exp %30 : vector<128x1xf32>
    %cst_20 = arith.constant 1.000000e+00 : f32
    %32 = vector.broadcast %cst_20 : f32 to vector<128x1xf32>
    %33 = arith.addf %32, %31 : vector<128x1xf32>
    %cst_21 = arith.constant 1.000000e+00 : f32
    %34 = vector.broadcast %cst_21 : f32 to vector<128x1xf32>
    %35 = arith.divf %34, %33 : vector<128x1xf32>
    %c0_22 = arith.constant 0 : index
    %c0_23 = arith.constant 0 : index
    %36 = vector.load %arg8[%c0_22, %c0_23] : memref<128x1xf32, #tpu.memory_space<vmem>>, vector<128x1xf32>
    tpu.vector_store %arg8[%c0_22, %c0_23], %35 {strides = array<i32>} : memref<128x1xf32, #tpu.memory_space<vmem>>, vector<128x1xf32>,
    return
  }
  func.func @transform_0(%arg0: i32) -> (i32, i32) {
    %c0_i32 = arith.constant 0 : i32
    %c0_i32_0 = arith.constant 0 : i32
    return %arg0, %c0_i32 : i32, i32
  }
  func.func @transform_1(%arg0: i32) -> (i32, i32) {
    %c0_i32 = arith.constant 0 : i32
    %c0_i32_0 = arith.constant 0 : i32
    %c0_i32_1 = arith.constant 0 : i32
    return %c0_i32, %c0_i32_0 : i32, i32
  }
  func.func @transform_2(%arg0: i32) -> (i32, i32) {
    %c0_i32 = arith.constant 0 : i32
    %c0_i32_0 = arith.constant 0 : i32
    %c0_i32_1 = arith.constant 0 : i32
    return %c0_i32, %c0_i32_0 : i32, i32
  }
  func.func @transform_3(%arg0: i32) -> (i32, i32) {
    %c0_i32 = arith.constant 0 : i32
    %c0_i32_0 = arith.constant 0 : i32
    %c0_i32_1 = arith.constant 0 : i32
    return %c0_i32, %c0_i32_0 : i32, i32
  }
  func.func @transform_4(%arg0: i32) -> (i32, i32) {
    %c0_i32 = arith.constant 0 : i32
    %c0_i32_0 = arith.constant 0 : i32
    %c0_i32_1 = arith.constant 0 : i32
    return %c0_i32, %c0_i32_0 : i32, i32
  }
  func.func @transform_5(%arg0: i32) -> (i32, i32) {
    %c0_i32 = arith.constant 0 : i32
    %c0_i32_0 = arith.constant 0 : i32
    %c0_i32_1 = arith.constant 0 : i32
    return %c0_i32, %c0_i32_0 : i32, i32
  }
  func.func @transform_6(%arg0: i32) -> (i32, i32) {
    %c0_i32 = arith.constant 0 : i32
    %c0_i32_0 = arith.constant 0 : i32
    %c0_i32_1 = arith.constant 0 : i32
    return %c0_i32, %c0_i32_0 : i32, i32
  }
  func.func @transform_7(%arg0: i32) -> (i32, i32) {
    %c0_i32 = arith.constant 0 : i32
    %c0_i32_0 = arith.constant 0 : i32
    return %arg0, %c0_i32 : i32, i32
  }
}

</mosaic_0001>

<bundles_post_ra>
// kernel: discriminator_forward.1
= control target key start
LH: loop header
LB: loop body
LE: loop exit
PB: predicated region body
PF: predicated region fallthrough
CT: control target
= control target key end

     0   :  { %s1548_s26 = smov 0   ;;  %s1793_s0 = inlined_call_operand.vmem [shape: f32[256,256], index: 0, kind: input, shape index: {}]   ;;  %s1794_s1 = inlined_call_operand.vmem [shape: bf16[256,128], index: 1, kind: input, shape index: {}]   ;;  %s1795_s2 = inlined_call_operand.vmem [shape: f32[1,128], index: 2, kind: input, shape index: {}]   ;;  %s1796_s3 = inlined_call_operand.vmem [shape: bf16[128,128], index: 3, kind: input, shape index: {}]   ;;  %s1797_s4 = inlined_call_operand.vmem [shape: f32[1,128], index: 4, kind: input, shape index: {}]   ;;  %s1798_s5 = inlined_call_operand.vmem [shape: bf16[128,1], index: 5, kind: input, shape index: {}]   ;;  %s1799_s6 = inlined_call_operand.<no memory space> [shape: f32[1,1], index: 6, kind: input, shape index: {}]   ;;  %s1800_s7 = inlined_call_operand.vmem [shape: f32[256,1], index: 7, kind: output, shape index: {}]  }
   0x1   :  { %v12_v0 = vstv %s1799_s6 }
   0x2   :  { %13 = vst [vmem:[#allocation2] sm:$0x1] %v12_v0 }
   0x3 LB: > { %s1185_s27 = sadd.s32 4294967295, %s1503_s26   ;;  %p1189_p0 = scmp.ge.s32.totalorder %s1503_s26, 1  ;;  %s1503_s26 = sphi %s1548_s26, %s19_s26  }
   0x4   : > { %p241_p1 = scmp.lt.s32.totalorder %s1503_s26, 3 }
   0x6   : > { %p242_p2 = pnand %p1189_p0, %p241_p1 }
   0x7   : > { %v1401_v1 = vld [vmem:[%s1794_s1 + $0x40] sm:$0xff] (!%p242_p2)   ;;  %s1190_s6 = sshll.u32 (!%p242_p2), %s1185_s27, 4  ;;  %v1403_v3 = vld [vmem:[%s1794_s1 + $0x48] sm:$0xff] (!%p242_p2)   ;;  %v1405_v5 = vld [vmem:[%s1794_s1 + $0x50] sm:$0xff] (!%p242_p2)  }
   0x8   : > { %245 = sbr.rel (%p242_p2) target bundleno = 792 (0x318), region = 48  ;;  %v1402_v2 = vld [vmem:[%s1794_s1] sm:$0xff] (!%p242_p2)   ;;  %1233 = vmatprep.subr.bf16.mxu0 (!%p242_p2), %v1401_v1  ;;  %p275_p3 = scmp.lt.s32.totalorder (!%p242_p2), %s1190_s6, 31  ;;  %v1404_v4 = vld [vmem:[%s1794_s1 + $0x8] sm:$0xff] (!%p242_p2)   ;;  %v1406_v6 = vld [vmem:[%s1794_s1 + $0x10] sm:$0xff] (!%p242_p2)  }
   0x9   : > { %1234 = vmatpush3.bf16.msra.mxu0 (!%p242_p2), %v1402_v2  ;;  %v1407_v7 = vld [vmem:[%s1794_s1 + $0x58] sm:$0xff] (!%p242_p2)   ;;  %v1409_v9 = vld [vmem:[%s1794_s1 + $0x60] sm:$0xff] (!%p242_p2)   ;;  %v1411_v11 = vld [vmem:[%s1794_s1 + $0x68] sm:$0xff] (!%p242_p2)  }
   0xa   : > { %1235 = vmatprep.subr.bf16.mxu0 (!%p242_p2), %v1403_v3  ;;  %v1408_v8 = vld [vmem:[%s1794_s1 + $0x18] sm:$0xff] (!%p242_p2)   ;;  %v1410_v10 = vld [vmem:[%s1794_s1 + $0x20] sm:$0xff] (!%p242_p2)   ;;  %v1412_v15 = vld [vmem:[%s1794_s1 + $0x28] sm:$0xff] (!%p242_p2)  }
   0xb   : > { %v1413_v16 = vld [vmem:[%s1794_s1 + $0x70] sm:$0xff] (!%p242_p2)   ;;  %v1415_v18 = vld [vmem:[%s1794_s1 + $0x78] sm:$0xff] (!%p242_p2)   ;;  %v1417_v24 = vld [vmem:[%s1796_s3] sm:$0xff] (!%p242_p2)  }
   0xc   : > { %v1414_v17 = vld [vmem:[%s1794_s1 + $0x30] sm:$0xff] (!%p242_p2)   ;;  %v1416_v19 = vld [vmem:[%s1794_s1 + $0x38] sm:$0xff] (!%p242_p2)   ;;  %v1418_v25 = vld [vmem:[%s1796_s3 + $0x8] sm:$0xff] (!%p242_p2)   ;;  %1329 = vmatprep.subr.bf16.mxu1 (!%p242_p2), %v1417_v24 }
   0xd   : > { %1236 = vmatpush3.bf16.msra.mxu0 (!%p242_p2), %v1404_v4  ;;  %v1419_v26 = vld [vmem:[%s1796_s3 + $0x10] sm:$0xff] (!%p242_p2)   ;;  %1330 = vmatpush3.bf16.msra.mxu1 (!%p242_p2), %v1417_v24  ;;  %v1420_v4 = vld [vmem:[%s1796_s3 + $0x18] sm:$0xff] (!%p242_p2)  }
   0xe   : > { %1237 = vmatprep.subr.bf16.mxu0 (!%p242_p2), %v1405_v5  ;;  %1331 = vmatprep.subr.bf16.mxu1 (!%p242_p2), %v1418_v25  ;;  %v1421_v5 = vld [vmem:[%s1796_s3 + $0x20] sm:$0xff] (!%p242_p2)  }
   0xf   : > { %s1802_s6 = smov (!%p275_p3, %s1190_s6), 31 }
  0x10   : > { %s1232_s19 = sshll.u32 %s1802_s6, 4  ;;  %s1194_s11 = sshll.u32 %s1802_s6, 3 }
  0x11   : > { %1238 = vmatpush3.bf16.msra.mxu0 %v1406_v6  ;;  %s1589_s27 = scalar_lea.vmem %s1793_s0, %s1232_s19  ;;  %1332 = vmatpush3.bf16.msra.mxu1 %v1418_v25  ;;  %v1422_v6 = vld [vmem:[%s1796_s3 + $0x28] sm:$0xff]   ;;  %s1748_s14 = scalar_lea.vmem %s1800_s7, %s1194_s11 }
  0x12   : > { %1239 = vmatprep.subr.bf16.mxu0 %v1407_v7  ;;  %v289_v12 = vld [vmem:[%s1589_s27 + $0x8] sm:$0xff]  ;;  %v291_v13 = vld [vmem:[%s1589_s27 + $0x18] sm:$0xff]  ;;  %v288_v20 = vld [vmem:[%s1589_s27] sm:$0xff]  ;;  %1333 = vmatprep.subr.bf16.mxu1 %v1419_v26 }
  0x13   : > { %v321_v14 = vpack.c.bf16 %v291_v13, %v289_v12  ;;  %v290_v21 = vld [vmem:[%s1589_s27 + $0x10] sm:$0xff]  ;;  %v293_v22 = vld [vmem:[%s1589_s27 + $0x28] sm:$0xff]  ;;  %v295_v23 = vld [vmem:[%s1589_s27 + $0x38] sm:$0xff] }
  0x14   : > { %v320_v27 = vpack.c.bf16 %v290_v21, %v288_v20  ;;  %v323_v28 = vpack.c.bf16 %v295_v23, %v293_v22  ;;  %v292_v29 = vld [vmem:[%s1589_s27 + $0x20] sm:$0xff]  ;;  %v294_v30 = vld [vmem:[%s1589_s27 + $0x30] sm:$0xff]  ;;  %v297_v31 = vld [vmem:[%s1589_s27 + $0x48] sm:$0xff] }
  0x15   : > { %1240 = vmatpush3.bf16.msra.mxu0 %v1408_v8  ;;  %503 = vmatprep.mubr.bf16.mxu0 %v321_v14  ;;  %v299_v32 = vld [vmem:[%s1589_s27 + $0x58] sm:$0xff]  ;;  %v322_v33 = vpack.c.bf16 %v294_v30, %v292_v29  ;;  %v296_v35 = vld [vmem:[%s1589_s27 + $0x40] sm:$0xff]  ;;  %v298_v36 = vld [vmem:[%s1589_s27 + $0x50] sm:$0xff] }
  0x16   : > { %1241 = vmatprep.subr.bf16.mxu0 %v1409_v9  ;;  %1334 = vmatpush3.bf16.msra.mxu1 %v1419_v26  ;;  %v325_v34 = vpack.c.bf16 %v299_v32, %v297_v31  ;;  %v301_v37 = vld [vmem:[%s1589_s27 + $0x68] sm:$0xff]  ;;  %v303_v38 = vld [vmem:[%s1589_s27 + $0x78] sm:$0xff]  ;;  %v324_v39 = vpack.c.bf16 %v298_v36, %v296_v35  ;;  %v300_v41 = vld [vmem:[%s1589_s27 + $0x60] sm:$0xff] }
  0x17   : > { %v327_v40 = vpack.c.bf16 %v303_v38, %v301_v37  ;;  %v302_v42 = vld [vmem:[%s1589_s27 + $0x70] sm:$0xff]  ;;  %v305_v43 = vld [vmem:[%s1589_s27 + $0x88] sm:$0xff]  ;;  %v307_v44 = vld [vmem:[%s1589_s27 + $0x98] sm:$0xff]  ;;  %1335 = vmatprep.subr.bf16.mxu1 %v1420_v4 }
  0x18   : > { %v326_v45 = vpack.c.bf16 %v302_v42, %v300_v41  ;;  %v329_v46 = vpack.c.bf16 %v307_v44, %v305_v43  ;;  %v304_v47 = vld [vmem:[%s1589_s27 + $0x80] sm:$0xff]  ;;  %v306_v48 = vld [vmem:[%s1589_s27 + $0x90] sm:$0xff]  ;;  %v309_v49 = vld [vmem:[%s1589_s27 + $0xa8] sm:$0xff] }
  0x19   : > { %1242 = vmatpush3.bf16.msra.mxu0 %v1410_v10  ;;  %v311_v50 = vld [vmem:[%s1589_s27 + $0xb8] sm:$0xff]  ;;  %v328_v51 = vpack.c.bf16 %v306_v48, %v304_v47  ;;  %v308_v53 = vld [vmem:[%s1589_s27 + $0xa0] sm:$0xff]  ;;  %v310_v54 = vld [vmem:[%s1589_s27 + $0xb0] sm:$0xff] }
  0x1a   : > { %1243 = vmatprep.subr.bf16.mxu0 %v1411_v11  ;;  %v331_v52 = vpack.c.bf16 %v311_v50, %v309_v49  ;;  %v313_v55 = vld [vmem:[%s1589_s27 + $0xc8] sm:$0xff]  ;;  %v315_v56 = vld [vmem:[%s1589_s27 + $0xd8] sm:$0xff]  ;;  %v330_v57 = vpack.c.bf16 %v310_v54, %v308_v53  ;;  %v312_v59 = vld [vmem:[%s1589_s27 + $0xc0] sm:$0xff]  ;;  %1336 = vmatpush3.bf16.msra.mxu1 %v1420_v4 }
  0x1b   : > { %v333_v58 = vpack.c.bf16 %v315_v56, %v313_v55  ;;  %v314_v60 = vld [vmem:[%s1589_s27 + $0xd0] sm:$0xff]  ;;  %v317_v61 = vld [vmem:[%s1589_s27 + $0xe8] sm:$0xff]  ;;  %v319_v62 = vld [vmem:[%s1589_s27 + $0xf8] sm:$0xff]  ;;  %1337 = vmatprep.subr.bf16.mxu1 %v1421_v5 }
  0x1c   : > { %v332_v63 = vpack.c.bf16 %v314_v60, %v312_v59  ;;  %v335_v0 = vpack.c.bf16 %v319_v62, %v317_v61  ;;  %v316_v1 = vld [vmem:[%s1589_s27 + $0xe0] sm:$0xff]  ;;  %v318_v2 = vld [vmem:[%s1589_s27 + $0xf0] sm:$0xff]  ;;  %v1424_v8 = vld [vmem:[%s1796_s3 + $0x38] sm:$0xff]  }
  0x1d   : > { %1244 = vmatpush3.bf16.msra.mxu0 %v1412_v15  ;;  %v334_v3 = vpack.c.bf16 %v318_v2, %v316_v1  ;;  %v1423_v7 = vld [vmem:[%s1796_s3 + $0x30] sm:$0xff]   ;;  %v1425_v9 = vld [vmem:[%s1798_s5] sm:$0xff]   ;;  %v1426_v42 = vld [vmem:[%s1798_s5 + $0x8] sm:$0xff]  }
  0x1e   : > { %1245 = vmatprep.subr.bf16.mxu0 %v1413_v16  ;;  %1338 = vmatpush3.bf16.msra.mxu1 %v1421_v5  ;;  %v1674_v11 = vld [vmem:[%s1795_s2] ss:$0 sm:$0xff]  ;;  %v1427_v47 = vld [vmem:[%s1798_s5 + $0x10] sm:$0xff]  }
  0x1f   : > { %1339 = vmatprep.subr.bf16.mxu1 %v1422_v6  ;;  %v1429_v62 = vld [vmem:[%s1798_s5 + $0x20] sm:$0xff]  }
  0x21   : > { %1246 = vmatpush3.bf16.msra.mxu0 %v1414_v17 }
  0x22   : > { %1247 = vmatprep.subr.bf16.mxu0 %v1415_v18  ;;  %1340 = vmatpush3.bf16.msra.mxu1 %v1422_v6 }
  0x23   : > { %1341 = vmatprep.subr.bf16.mxu1 %v1423_v7 }
  0x25   : > { %1248 = vmatpush3.bf16.msra.mxu0 %v1416_v19 }
  0x26   : > { %1342 = vmatpush3.bf16.msra.mxu1 %v1423_v7 }
  0x27   : > { %1343 = vmatprep.subr.bf16.mxu1 %v1424_v8 }
  0x28   : > { %504 = vmatmul.mubr.bf16.vlgmr.msra.gmra.mrb[0].mxu0 %v320_v27 }
  0x29   : > { %511 = vmatprep.mubr.bf16.mxu0 %v323_v28 }
  0x2a   : > { %1344 = vmatpush3.bf16.msra.mxu1 %v1424_v8 }
  0x2b   : > { %1361 = vmatprep.subr.bf16.mxu1 %v1425_v9 }
  0x30   : > { %512 = vmatmul.mubr.bf16.gmra.mrb[4].mxu0 %v322_v33 }
  0x31   : > { %519 = vmatprep.mubr.bf16.mxu0 %v325_v34 }
  0x38   : > { %520 = vmatmul.mubr.bf16.gmra.mrb[8].mxu0 %v324_v39 }
  0x39   : > { %527 = vmatprep.mubr.bf16.mxu0 %v327_v40 }
  0x40   : > { %528 = vmatmul.mubr.bf16.gmra.mrb[12].mxu0 %v326_v45 }
  0x41   : > { %535 = vmatprep.mubr.bf16.mxu0 %v329_v46 }
  0x48   : > { %536 = vmatmul.mubr.bf16.gmra.mrb[16].mxu0 %v328_v51 }
  0x49   : > { %543 = vmatprep.mubr.bf16.mxu0 %v331_v52 }
  0x50   : > { %544 = vmatmul.mubr.bf16.gmra.mrb[20].mxu0 %v330_v57  ;;  %v1428_v57 = vld [vmem:[%s1798_s5 + $0x18] sm:$0xff]  }
  0x51   : > { %551 = vmatprep.mubr.bf16.mxu0 %v333_v58 }
  0x58   : > { %552 = vmatmul.mubr.bf16.gmra.mrb[24].mxu0 %v332_v63 }
  0x59   : > { %559 = vmatprep.mubr.bf16.mxu0 %v335_v0 }
  0x60   : > { %560 = vmatmul.mubr.bf16.gmra.mrb[28].mxu0 %v334_v3 }
  0xfb   : > { %v1249_v10 = vpop.f32.mrb[0].mxu0 }
  0xfc   : > { %v1250_v12 = vpop.f32.mrb[1].mxu0 }
  0xfd   : > { %v1251_v13 = vadd.f32 %v1250_v12, %v1249_v10  ;;  %v1252_v14 = vpop.f32.mrb[2].mxu0 }
  0xfe   : > { %v1253_v15 = vpop.f32.mrb[3].mxu0 }
  0xff   : > { %v506_v16 = vadd.f32 %v1251_v13, %v1674_v11  ;;  %v1254_v17 = vadd.f32 %v1253_v15, %v1252_v14 }
 0x101   : > { %v509_v18 = vadd.f32 %v1254_v17, %v1674_v11  ;;  %v584_v19 = vmul.f32 0.2, %v506_v16  ;;  %vm568_vm0 = vcmp.gt.f32.partialorder %v506_v16, 0.0 }
 0x103   : > { %v1255_v20 = vpop.f32.mrb[4].mxu0  ;;  %vm569_vm1 = vcmp.gt.f32.partialorder %v509_v18, 0.0  ;;  %v585_v21 = vmul.f32 0.2, %v509_v18  ;;  %v600_v25 = vsel %vm568_vm0, %v506_v16, %v584_v19 }
 0x104   : > { %v1256_v22 = vpop.f32.mrb[5].mxu0 }
 0x105   : > { %v1257_v23 = vadd.f32 %v1256_v22, %v1255_v20  ;;  %v1258_v24 = vpop.f32.mrb[6].mxu0  ;;  %v601_v26 = vsel %vm569_vm1, %v509_v18, %v585_v21 }
 0x106   : > { %v1259_v27 = vpop.f32.mrb[7].mxu0  ;;  %v616_v28 = vpack.c.bf16 %v601_v26, %v600_v25 }
 0x107   : > { %v514_v29 = vadd.f32 %v1257_v23, %v1674_v11  ;;  %v1260_v30 = vadd.f32 %v1259_v27, %v1258_v24 }
 0x108   : > { %1345 = vmatprep.mubr.bf16.mxu1 %v616_v28 }
 0x109   : > { %v586_v31 = vmul.f32 0.2, %v514_v29  ;;  %v517_v32 = vadd.f32 %v1260_v30, %v1674_v11  ;;  %vm570_vm2 = vcmp.gt.f32.partialorder %v514_v29, 0.0 }
 0x10b   : > { %vm571_vm3 = vcmp.gt.f32.partialorder %v517_v32, 0.0  ;;  %v587_v33 = vmul.f32 0.2, %v517_v32  ;;  %v1261_v34 = vpop.f32.mrb[8].mxu0  ;;  %v602_v38 = vsel %vm570_vm2, %v514_v29, %v586_v31 }
 0x10c   : > { %v1262_v35 = vpop.f32.mrb[9].mxu0 }
 0x10d   : > { %v1263_v36 = vadd.f32 %v1262_v35, %v1261_v34  ;;  %v1264_v37 = vpop.f32.mrb[10].mxu0  ;;  %v603_v39 = vsel %vm571_vm3, %v517_v32, %v587_v33 }
 0x10e   : > { %v1265_v40 = vpop.f32.mrb[11].mxu0  ;;  %v617_v41 = vpack.c.bf16 %v603_v39, %v602_v38 }
 0x10f   : > { %v522_v43 = vadd.f32 %v1263_v36, %v1674_v11  ;;  %v1266_v44 = vadd.f32 %v1265_v40, %v1264_v37 }
 0x110   : > { %1346 = vmatmul.mubr.bf16.vlgmr.msra.gmra.mrb[0].mxu1 %v617_v41 }
 0x111   : > { %v588_v45 = vmul.f32 0.2, %v522_v43  ;;  %v525_v46 = vadd.f32 %v1266_v44, %v1674_v11  ;;  %1362 = vmatpush3.bf16.msra.mxu1 %v1425_v9  ;;  %vm572_vm4 = vcmp.gt.f32.partialorder %v522_v43, 0.0 }
 0x112   : > { %1363 = vmatprep.subr.bf16.mxu1 %v1426_v42 }
 0x113   : > { %vm573_vm5 = vcmp.gt.f32.partialorder %v525_v46, 0.0  ;;  %v589_v48 = vmul.f32 0.2, %v525_v46  ;;  %v1267_v49 = vpop.f32.mrb[12].mxu0  ;;  %v604_v53 = vsel %vm572_vm4, %v522_v43, %v588_v45 }
 0x114   : > { %v1268_v50 = vpop.f32.mrb[13].mxu0 }
 0x115   : > { %v1269_v51 = vadd.f32 %v1268_v50, %v1267_v49  ;;  %v1270_v52 = vpop.f32.mrb[14].mxu0  ;;  %v605_v54 = vsel %vm573_vm5, %v525_v46, %v589_v48  ;;  %1364 = vmatpush3.bf16.msra.mxu1 %v1426_v42 }
 0x116   : > { %v1271_v55 = vpop.f32.mrb[15].mxu0  ;;  %v618_v56 = vpack.c.bf16 %v605_v54, %v604_v53  ;;  %1365 = vmatprep.subr.bf16.mxu1 %v1427_v47 }
 0x117   : > { %v530_v58 = vadd.f32 %v1269_v51, %v1674_v11  ;;  %v1272_v59 = vadd.f32 %v1271_v55, %v1270_v52 }
 0x118   : > { %1349 = vmatprep.mubr.bf16.mxu1 %v618_v56  ;;  %v1430_v56 = vld [vmem:[%s1798_s5 + $0x28] sm:$0xff]  }
 0x119   : > { %v590_v60 = vmul.f32 0.2, %v530_v58  ;;  %v533_v61 = vadd.f32 %v1272_v59, %v1674_v11  ;;  %1366 = vmatpush3.bf16.msra.mxu1 %v1427_v47  ;;  %vm574_vm6 = vcmp.gt.f32.partialorder %v530_v58, 0.0 }
 0x11a   : > { %1367 = vmatprep.subr.bf16.mxu1 %v1428_v57 }
 0x11b   : > { %vm575_vm7 = vcmp.gt.f32.partialorder %v533_v61, 0.0  ;;  %v591_v63 = vmul.f32 0.2, %v533_v61  ;;  %v1273_v0 = vpop.f32.mrb[16].mxu0  ;;  %v606_v4 = vsel %vm574_vm6, %v530_v58, %v590_v60  ;;  %v1716_v58 = vld [vmem:[%s1797_s4] ss:$0 sm:$0xff] }
 0x11c   : > { %v1274_v1 = vpop.f32.mrb[17].mxu0 }
 0x11d   : > { %v1275_v2 = vadd.f32 %v1274_v1, %v1273_v0  ;;  %v1276_v3 = vpop.f32.mrb[18].mxu0  ;;  %v607_v5 = vsel %vm575_vm7, %v533_v61, %v591_v63  ;;  %1368 = vmatpush3.bf16.msra.mxu1 %v1428_v57  ;;  %v1431_v57 = vld [vmem:[%s1798_s5 + $0x30] sm:$0xff]  }
 0x11e   : > { %v1277_v6 = vpop.f32.mrb[19].mxu0  ;;  %v619_v7 = vpack.c.bf16 %v607_v5, %v606_v4  ;;  %1369 = vmatprep.subr.bf16.mxu1 %v1429_v62 }
 0x11f   : > { %v538_v8 = vadd.f32 %v1275_v2, %v1674_v11  ;;  %v1278_v9 = vadd.f32 %v1277_v6, %v1276_v3 }
 0x120   : > { %1350 = vmatmul.mubr.bf16.gmra.mrb[4].mxu1 %v619_v7 }
 0x121   : > { %v592_v10 = vmul.f32 0.2, %v538_v8  ;;  %v541_v12 = vadd.f32 %v1278_v9, %v1674_v11  ;;  %1370 = vmatpush3.bf16.msra.mxu1 %v1429_v62  ;;  %vm576_vm8 = vcmp.gt.f32.partialorder %v538_v8, 0.0 }
 0x122   : > { %1371 = vmatprep.subr.bf16.mxu1 %v1430_v56 }
 0x123   : > { %vm577_vm9 = vcmp.gt.f32.partialorder %v541_v12, 0.0  ;;  %v593_v13 = vmul.f32 0.2, %v541_v12  ;;  %v1279_v14 = vpop.f32.mrb[20].mxu0  ;;  %v608_v18 = vsel %vm576_vm8, %v538_v8, %v592_v10 }
 0x124   : > { %v1280_v15 = vpop.f32.mrb[21].mxu0 }
 0x125   : > { %v1281_v16 = vadd.f32 %v1280_v15, %v1279_v14  ;;  %v1282_v17 = vpop.f32.mrb[22].mxu0  ;;  %v609_v19 = vsel %vm577_vm9, %v541_v12, %v593_v13  ;;  %1372 = vmatpush3.bf16.msra.mxu1 %v1430_v56 }
 0x126   : > { %v1283_v20 = vpop.f32.mrb[23].mxu0  ;;  %v620_v21 = vpack.c.bf16 %v609_v19, %v608_v18  ;;  %1373 = vmatprep.subr.bf16.mxu1 %v1431_v57 }
 0x127   : > { %v546_v22 = vadd.f32 %v1281_v16, %v1674_v11  ;;  %v1284_v23 = vadd.f32 %v1283_v20, %v1282_v17 }
 0x128   : > { %1353 = vmatprep.mubr.bf16.mxu1 %v620_v21 }
 0x129   : > { %v594_v24 = vmul.f32 0.2, %v546_v22  ;;  %v549_v25 = vadd.f32 %v1284_v23, %v1674_v11  ;;  %vm578_vm10 = vcmp.gt.f32.partialorder %v546_v22, 0.0  ;;  %1374 = vmatpush3.bf16.msra.mxu1 %v1431_v57 }
 0x12b   : > { %vm579_vm11 = vcmp.gt.f32.partialorder %v549_v25, 0.0  ;;  %v595_v26 = vmul.f32 0.2, %v549_v25  ;;  %v1285_v27 = vpop.f32.mrb[24].mxu0  ;;  %v610_v31 = vsel %vm578_vm10, %v546_v22, %v594_v24 }
 0x12c   : > { %v1286_v28 = vpop.f32.mrb[25].mxu0 }
 0x12d   : > { %v1287_v29 = vadd.f32 %v1286_v28, %v1285_v27  ;;  %v1288_v30 = vpop.f32.mrb[26].mxu0  ;;  %v611_v32 = vsel %vm579_vm11, %v549_v25, %v595_v26 }
 0x12e   : > { %v1289_v33 = vpop.f32.mrb[27].mxu0  ;;  %v621_v34 = vpack.c.bf16 %v611_v32, %v610_v31 }
 0x12f   : > { %v554_v35 = vadd.f32 %v1287_v29, %v1674_v11  ;;  %v1290_v36 = vadd.f32 %v1289_v33, %v1288_v30 }
 0x130   : > { %1354 = vmatmul.mubr.bf16.gmra.mrb[8].mxu1 %v621_v34 }
 0x131   : > { %v596_v37 = vmul.f32 0.2, %v554_v35  ;;  %v557_v38 = vadd.f32 %v1290_v36, %v1674_v11  ;;  %vm580_vm12 = vcmp.gt.f32.partialorder %v554_v35, 0.0 }
 0x133   : > { %vm581_vm13 = vcmp.gt.f32.partialorder %v557_v38, 0.0  ;;  %v597_v39 = vmul.f32 0.2, %v557_v38  ;;  %v1291_v40 = vpop.f32.mrb[28].mxu0  ;;  %v612_v44 = vsel %vm580_vm12, %v554_v35, %v596_v37 }
 0x134   : > { %v1292_v41 = vpop.f32.mrb[29].mxu0 }
 0x135   : > { %v1293_v42 = vadd.f32 %v1292_v41, %v1291_v40  ;;  %v1294_v43 = vpop.f32.mrb[30].mxu0  ;;  %v613_v45 = vsel %vm581_vm13, %v557_v38, %v597_v39 }
 0x136   : > { %v1295_v46 = vpop.f32.mrb[31].mxu0  ;;  %v622_v47 = vpack.c.bf16 %v613_v45, %v612_v44 }
 0x137   : > { %v562_v48 = vadd.f32 %v1293_v42, %v1674_v11  ;;  %v1296_v49 = vadd.f32 %v1295_v46, %v1294_v43 }
 0x138   : > { %1357 = vmatprep.mubr.bf16.mxu1 %v622_v47 }
 0x139   : > { %v598_v50 = vmul.f32 0.2, %v562_v48  ;;  %v565_v51 = vadd.f32 %v1296_v49, %v1674_v11  ;;  %vm582_vm14 = vcmp.gt.f32.partialorder %v562_v48, 0.0  ;;  %v1432_v11 = vld [vmem:[%s1798_s5 + $0x38] sm:$0xff]  }
 0x13a   : > { %1375 = vmatprep.subr.bf16.mxu1 %v1432_v11 }
 0x13b   : > { %vm583_vm15 = vcmp.gt.f32.partialorder %v565_v51, 0.0  ;;  %v599_v52 = vmul.f32 0.2, %v565_v51  ;;  %v614_v53 = vsel %vm582_vm14, %v562_v48, %v598_v50  ;;  %1376 = vmatpush3.bf16.msra.mxu1 %v1432_v11 }
 0x13d   : > { %v615_v54 = vsel %vm583_vm15, %v565_v51, %v599_v52 }
 0x13e   : > { %v623_v55 = vpack.c.bf16 %v615_v54, %v614_v53 }
 0x140   : > { %1358 = vmatmul.mubr.bf16.gmra.mrb[12].mxu1 %v623_v55 }
 0x1e3   : > { %v1347_v59 = vpop.f32.mrb[0].mxu1 }
 0x1e4   : > { %v738_v60 = vadd.f32 %v1347_v59, %v1716_v58  ;;  %v729_v61 = vpop.f32.mrb[1].mxu1 }
 0x1e5   : > { %v730_v62 = vadd.f32 %v1716_v58, %v729_v61  ;;  %v1348_v63 = vpop.f32.mrb[2].mxu1 }
 0x1e6   : > { %v810_v0 = vmul.f32 0.2, %v738_v60  ;;  %v741_v1 = vadd.f32 %v1348_v63, %v1716_v58  ;;  %v732_v2 = vpop.f32.mrb[3].mxu1  ;;  %vm794_vm0 = vcmp.gt.f32.partialorder %v738_v60, 0.0 }
 0x1e7   : > { %v808_v3 = vmul.f32 0.2, %v730_v62  ;;  %v733_v4 = vadd.f32 %v1716_v58, %v732_v2  ;;  %vm792_vm1 = vcmp.gt.f32.partialorder %v730_v62, 0.0 }
 0x1e8   : > { %vm795_vm2 = vcmp.gt.f32.partialorder %v741_v1, 0.0  ;;  %v811_v5 = vmul.f32 0.2, %v741_v1  ;;  %v826_v7 = vsel %vm794_vm0, %v738_v60, %v810_v0  ;;  %vm1112_vm0 = vcmask 7168  }
 0x1e9   : > { %vm793_vm3 = vcmp.gt.f32.partialorder %v733_v4, 0.0  ;;  %v809_v6 = vmul.f32 0.2, %v733_v4  ;;  %v824_v10 = vsel %vm792_vm1, %v730_v62, %v808_v3 }
 0x1ea   : > { %v827_v8 = vsel %vm795_vm2, %v741_v1, %v811_v5 }
 0x1eb   : > { %v841_v9 = vpack.c.bf16 %v827_v8, %v826_v7  ;;  %v825_v12 = vsel %vm793_vm3, %v733_v4, %v809_v6  ;;  %v1734_v4 = vld [vmem:[#allocation2] ss:$0 sm:$0xff] }
 0x1ec   : > { %v840_v13 = vpack.c.bf16 %v825_v12, %v824_v10 }
 0x1ee   : > { %1377 = vmatprep.mubr.bf16.mxu1 %v840_v13 }
 0x1ef   : > { %1378 = vmatmul.mubr.bf16.vlgmr.msra.gmra.mrb[16].mxu1 %v841_v9 }
 0x1f3   : > { %v1351_v14 = vpop.f32.mrb[4].mxu1 }
 0x1f4   : > { %v754_v15 = vadd.f32 %v1351_v14, %v1716_v58  ;;  %v745_v16 = vpop.f32.mrb[5].mxu1 }
 0x1f5   : > { %v746_v17 = vadd.f32 %v1716_v58, %v745_v16  ;;  %v1352_v18 = vpop.f32.mrb[6].mxu1 }
 0x1f6   : > { %v814_v19 = vmul.f32 0.2, %v754_v15  ;;  %v757_v20 = vadd.f32 %v1352_v18, %v1716_v58  ;;  %v748_v21 = vpop.f32.mrb[7].mxu1  ;;  %vm798_vm4 = vcmp.gt.f32.partialorder %v754_v15, 0.0 }
 0x1f7   : > { %v812_v22 = vmul.f32 0.2, %v746_v17  ;;  %v749_v23 = vadd.f32 %v1716_v58, %v748_v21  ;;  %vm796_vm5 = vcmp.gt.f32.partialorder %v746_v17, 0.0 }
 0x1f8   : > { %vm799_vm6 = vcmp.gt.f32.partialorder %v757_v20, 0.0  ;;  %v815_v24 = vmul.f32 0.2, %v757_v20  ;;  %v830_v26 = vsel %vm798_vm4, %v754_v15, %v814_v19 }
 0x1f9   : > { %vm797_vm7 = vcmp.gt.f32.partialorder %v749_v23, 0.0  ;;  %v813_v25 = vmul.f32 0.2, %v749_v23  ;;  %v828_v28 = vsel %vm796_vm5, %v746_v17, %v812_v22 }
 0x1fa   : > { %v831_v27 = vsel %vm799_vm6, %v757_v20, %v815_v24 }
 0x1fb   : > { %v829_v29 = vsel %vm797_vm7, %v749_v23, %v813_v25  ;;  %v843_v30 = vpack.c.bf16 %v831_v27, %v830_v26 }
 0x1fc   : > { %v842_v31 = vpack.c.bf16 %v829_v29, %v828_v28 }
 0x1fe   : > { %1381 = vmatprep.mubr.bf16.mxu1 %v842_v31 }
 0x1ff   : > { %1382 = vmatmul.mubr.bf16.gmra.mrb[20].mxu1 %v843_v30 }
 0x203   : > { %v1355_v32 = vpop.f32.mrb[8].mxu1 }
 0x204   : > { %v770_v33 = vadd.f32 %v1355_v32, %v1716_v58  ;;  %v761_v34 = vpop.f32.mrb[9].mxu1 }
 0x205   : > { %v762_v35 = vadd.f32 %v1716_v58, %v761_v34  ;;  %v1356_v36 = vpop.f32.mrb[10].mxu1 }
 0x206   : > { %v818_v37 = vmul.f32 0.2, %v770_v33  ;;  %v773_v38 = vadd.f32 %v1356_v36, %v1716_v58  ;;  %v764_v39 = vpop.f32.mrb[11].mxu1  ;;  %vm802_vm8 = vcmp.gt.f32.partialorder %v770_v33, 0.0 }
 0x207   : > { %v816_v40 = vmul.f32 0.2, %v762_v35  ;;  %v765_v41 = vadd.f32 %v1716_v58, %v764_v39  ;;  %vm800_vm9 = vcmp.gt.f32.partialorder %v762_v35, 0.0 }
 0x208   : > { %vm803_vm10 = vcmp.gt.f32.partialorder %v773_v38, 0.0  ;;  %v819_v42 = vmul.f32 0.2, %v773_v38  ;;  %v834_v44 = vsel %vm802_vm8, %v770_v33, %v818_v37 }
 0x209   : > { %vm801_vm11 = vcmp.gt.f32.partialorder %v765_v41, 0.0  ;;  %v817_v43 = vmul.f32 0.2, %v765_v41  ;;  %v832_v46 = vsel %vm800_vm9, %v762_v35, %v816_v40 }
 0x20a   : > { %v835_v45 = vsel %vm803_vm10, %v773_v38, %v819_v42 }
 0x20b   : > { %v833_v47 = vsel %vm801_vm11, %v765_v41, %v817_v43  ;;  %v845_v48 = vpack.c.bf16 %v835_v45, %v834_v44 }
 0x20c   : > { %v844_v49 = vpack.c.bf16 %v833_v47, %v832_v46 }
 0x20e   : > { %1385 = vmatprep.mubr.bf16.mxu1 %v844_v49 }
 0x20f   : > { %1386 = vmatmul.mubr.bf16.gmra.mrb[24].mxu1 %v845_v48 }
 0x213   : > { %v1359_v50 = vpop.f32.mrb[12].mxu1 }
 0x214   : > { %v786_v51 = vadd.f32 %v1359_v50, %v1716_v58  ;;  %v777_v52 = vpop.f32.mrb[13].mxu1 }
 0x215   : > { %v778_v53 = vadd.f32 %v1716_v58, %v777_v52  ;;  %v1360_v54 = vpop.f32.mrb[14].mxu1 }
 0x216   : > { %v822_v55 = vmul.f32 0.2, %v786_v51  ;;  %v789_v56 = vadd.f32 %v1360_v54, %v1716_v58  ;;  %v780_v57 = vpop.f32.mrb[15].mxu1  ;;  %vm806_vm12 = vcmp.gt.f32.partialorder %v786_v51, 0.0 }
 0x217   : > { %v820_v11 = vmul.f32 0.2, %v778_v53  ;;  %v781_v59 = vadd.f32 %v1716_v58, %v780_v57  ;;  %vm804_vm13 = vcmp.gt.f32.partialorder %v778_v53, 0.0 }
 0x218   : > { %vm807_vm14 = vcmp.gt.f32.partialorder %v789_v56, 0.0  ;;  %v823_v60 = vmul.f32 0.2, %v789_v56  ;;  %v838_v62 = vsel %vm806_vm12, %v786_v51, %v822_v55 }
 0x219   : > { %vm805_vm15 = vcmp.gt.f32.partialorder %v781_v59, 0.0  ;;  %v821_v61 = vmul.f32 0.2, %v781_v59  ;;  %v836_v0 = vsel %vm804_vm13, %v778_v53, %v820_v11 }
 0x21a   : > { %v839_v63 = vsel %vm807_vm14, %v789_v56, %v823_v60 }
 0x21b   : > { %v837_v1 = vsel %vm805_vm15, %v781_v59, %v821_v61  ;;  %v847_v2 = vpack.c.bf16 %v839_v63, %v838_v62 }
 0x21c   : > { %v846_v3 = vpack.c.bf16 %v837_v1, %v836_v0 }
 0x21e   : > { %1389 = vmatprep.mubr.bf16.mxu1 %v846_v3 }
 0x21f   : > { %1390 = vmatmul.mubr.bf16.gmra.mrb[28].mxu1 %v847_v2 }
 0x2c2   : > { %v1379_v5 = vpop.f32.mrb[16].mxu1 }
 0x2c3   : > { %v962_v6 = vadd.f32 %v1379_v5, %v1734_v4  ;;  %v953_v7 = vpop.f32.mrb[17].mxu1 }
 0x2c4   : > { %v954_v58 = vadd.f32 %v1734_v4, %v953_v7  ;;  %v1380_v8 = vpop.f32.mrb[18].mxu1 }
 0x2c5   : > { %v1018_v9 = vsub.f32 0.0, %v962_v6  ;;  %v965_v10 = vadd.f32 %v1380_v8, %v1734_v4  ;;  %v956_v12 = vpop.f32.mrb[19].mxu1 }
 0x2c6   : > { %v1016_v13 = vsub.f32 0.0, %v954_v58  ;;  %v957_v14 = vadd.f32 %v1734_v4, %v956_v12 }
 0x2c7   : > { %v1036_v15 = vmul.f32 1.442695, %v1018_v9  ;;  %v1019_v16 = vsub.f32 0.0, %v965_v10 }
 0x2c8   : > { %v1032_v17 = vmul.f32 1.442695, %v1016_v13  ;;  %v1017_v18 = vsub.f32 0.0, %v957_v14 }
 0x2c9   : > { %1433 = vpow2.f32 %v1036_v15  ;;  %v1038_v19 = vmul.f32 1.442695, %v1019_v16 }
 0x2ca   : > { %1435 = vpow2.f32 %v1032_v17  ;;  %v1034_v20 = vmul.f32 1.442695, %v1017_v18 }
 0x2cb   : > { %1437 = vpow2.f32 %v1038_v19 }
 0x2cc   : > { %1439 = vpow2.f32 %v1034_v20 }
 0x2d2   : > { %v1383_v21 = vpop.f32.mrb[20].mxu1 }
 0x2d3   : > { %v1434_v22 = vpop.eup %1433  ;;  %v978_v23 = vadd.f32 %v1383_v21, %v1734_v4  ;;  %v969_v24 = vpop.f32.mrb[21].mxu1 }
 0x2d4   : > { %v1436_v25 = vpop.eup %1435  ;;  %v1066_v26 = vadd.f32 1.0, %v1434_v22  ;;  %v970_v27 = vadd.f32 %v1734_v4, %v969_v24  ;;  %v1384_v28 = vpop.f32.mrb[22].mxu1 }
 0x2d5   : > { %v1438_v29 = vpop.eup %1437  ;;  %v1064_v30 = vadd.f32 1.0, %v1436_v25  ;;  %v1022_v31 = vsub.f32 0.0, %v978_v23  ;;  %v981_v32 = vadd.f32 %v1384_v28, %v1734_v4  ;;  %v972_v33 = vpop.f32.mrb[23].mxu1 }
 0x2d6   : > { %v1440_v34 = vpop.eup %1439  ;;  %1441 = vrcp.f32 %v1066_v26  ;;  %v1067_v35 = vadd.f32 1.0, %v1438_v29  ;;  %v1020_v36 = vsub.f32 0.0, %v970_v27  ;;  %v973_v37 = vadd.f32 %v1734_v4, %v972_v33 }
 0x2d7   : > { %1443 = vrcp.f32 %v1064_v30  ;;  %v1065_v38 = vadd.f32 1.0, %v1440_v34  ;;  %v1044_v39 = vmul.f32 1.442695, %v1022_v31  ;;  %v1023_v40 = vsub.f32 0.0, %v981_v32 }
 0x2d8   : > { %1445 = vrcp.f32 %v1067_v35  ;;  %v1040_v41 = vmul.f32 1.442695, %v1020_v36  ;;  %v1021_v42 = vsub.f32 0.0, %v973_v37 }
 0x2d9   : > { %1447 = vrcp.f32 %v1065_v38  ;;  %v1046_v43 = vmul.f32 1.442695, %v1023_v40 }
 0x2da   : > { %1449 = vpow2.f32 %v1044_v39  ;;  %v1042_v44 = vmul.f32 1.442695, %v1021_v42 }
 0x2db   : > { %1451 = vpow2.f32 %v1040_v41 }
 0x2dc   : > { %1453 = vpow2.f32 %v1046_v43 }
 0x2dd   : > { %1455 = vpow2.f32 %v1042_v44 }
 0x2e0   : > { %v1442_v45 = vpop.eup %1441 }
 0x2e1   : > { %v1444_v46 = vpop.eup %1443  ;;  %1115 = vst.msk [vmem:[%s1748_s14 + $0x10] sm:$0xff] %vm1112_vm0, %v1442_v45 }
 0x2e2   : > { %v1446_v47 = vpop.eup %1445  ;;  %1113 = vst.msk [vmem:[%s1748_s14] sm:$0xff] %vm1112_vm0, %v1444_v46  ;;  %v1387_v48 = vpop.f32.mrb[24].mxu1 }
 0x2e3   : > { %v1448_v49 = vpop.eup %1447  ;;  %1116 = vst.msk [vmem:[%s1748_s14 + $0x18] sm:$0xff] %vm1112_vm0, %v1446_v47  ;;  %v994_v50 = vadd.f32 %v1387_v48, %v1734_v4  ;;  %v985_v51 = vpop.f32.mrb[25].mxu1 }
 0x2e4   : > { %v1450_v52 = vpop.eup %1449  ;;  %1114 = vst.msk [vmem:[%s1748_s14 + $0x8] sm:$0xff] %vm1112_vm0, %v1448_v49  ;;  %v986_v53 = vadd.f32 %v1734_v4, %v985_v51  ;;  %v1388_v54 = vpop.f32.mrb[26].mxu1 }
 0x2e5   : > { %v1452_v55 = vpop.eup %1451  ;;  %v1070_v56 = vadd.f32 1.0, %v1450_v52  ;;  %v1026_v57 = vsub.f32 0.0, %v994_v50  ;;  %v997_v11 = vadd.f32 %v1388_v54, %v1734_v4  ;;  %v988_v59 = vpop.f32.mrb[27].mxu1 }
 0x2e6   : > { %v1454_v60 = vpop.eup %1453  ;;  %v1068_v61 = vadd.f32 1.0, %v1452_v55  ;;  %v1024_v62 = vsub.f32 0.0, %v986_v53  ;;  %v989_v63 = vadd.f32 %v1734_v4, %v988_v59 }
 0x2e7   : > { %v1456_v0 = vpop.eup %1455  ;;  %1457 = vrcp.f32 %v1070_v56  ;;  %v1071_v1 = vadd.f32 1.0, %v1454_v60  ;;  %v1052_v2 = vmul.f32 1.442695, %v1026_v57  ;;  %v1027_v3 = vsub.f32 0.0, %v997_v11 }
 0x2e8   : > { %1459 = vrcp.f32 %v1068_v61  ;;  %v1069_v5 = vadd.f32 1.0, %v1456_v0  ;;  %v1048_v6 = vmul.f32 1.442695, %v1024_v62  ;;  %v1025_v7 = vsub.f32 0.0, %v989_v63 }
 0x2e9   : > { %1461 = vrcp.f32 %v1071_v1  ;;  %v1054_v58 = vmul.f32 1.442695, %v1027_v3 }
 0x2ea   : > { %1463 = vrcp.f32 %v1069_v5  ;;  %v1050_v8 = vmul.f32 1.442695, %v1025_v7 }
 0x2eb   : > { %1465 = vpow2.f32 %v1052_v2 }
 0x2ec   : > { %1467 = vpow2.f32 %v1048_v6 }
 0x2ed   : > { %1469 = vpow2.f32 %v1054_v58 }
 0x2ee   : > { %1471 = vpow2.f32 %v1050_v8 }
 0x2f1   : > { %v1458_v9 = vpop.eup %1457 }
 0x2f2   : > { %v1460_v10 = vpop.eup %1459  ;;  %1119 = vst.msk [vmem:[%s1748_s14 + $0x30] sm:$0xff] %vm1112_vm0, %v1458_v9  ;;  %v1391_v12 = vpop.f32.mrb[28].mxu1 }
 0x2f3   : > { %v1462_v13 = vpop.eup %1461  ;;  %1117 = vst.msk [vmem:[%s1748_s14 + $0x20] sm:$0xff] %vm1112_vm0, %v1460_v10  ;;  %v1010_v14 = vadd.f32 %v1391_v12, %v1734_v4  ;;  %v1001_v15 = vpop.f32.mrb[29].mxu1 }
 0x2f4   : > { %v1464_v16 = vpop.eup %1463  ;;  %1120 = vst.msk [vmem:[%s1748_s14 + $0x38] sm:$0xff] %vm1112_vm0, %v1462_v13  ;;  %v1002_v17 = vadd.f32 %v1734_v4, %v1001_v15  ;;  %v1392_v18 = vpop.f32.mrb[30].mxu1 }
 0x2f5   : > { %v1466_v19 = vpop.eup %1465  ;;  %1118 = vst.msk [vmem:[%s1748_s14 + $0x28] sm:$0xff] %vm1112_vm0, %v1464_v16  ;;  %v1030_v20 = vsub.f32 0.0, %v1010_v14  ;;  %v1013_v21 = vadd.f32 %v1392_v18, %v1734_v4  ;;  %v1004_v22 = vpop.f32.mrb[31].mxu1 }
 0x2f6   : > { %v1468_v23 = vpop.eup %1467  ;;  %v1074_v24 = vadd.f32 1.0, %v1466_v19  ;;  %v1028_v25 = vsub.f32 0.0, %v1002_v17  ;;  %v1005_v26 = vadd.f32 %v1734_v4, %v1004_v22 }
 0x2f7   : > { %v1470_v27 = vpop.eup %1469  ;;  %v1072_v28 = vadd.f32 1.0, %v1468_v23  ;;  %v1031_v29 = vsub.f32 0.0, %v1013_v21  ;;  %v1060_v32 = vmul.f32 1.442695, %v1030_v20 }
 0x2f8   : > { %v1472_v30 = vpop.eup %1471  ;;  %1473 = vrcp.f32 %v1074_v24  ;;  %v1075_v31 = vadd.f32 1.0, %v1470_v27  ;;  %v1029_v33 = vsub.f32 0.0, %v1005_v26  ;;  %v1056_v35 = vmul.f32 1.442695, %v1028_v25 }
 0x2f9   : > { %1475 = vrcp.f32 %v1072_v28  ;;  %v1073_v34 = vadd.f32 1.0, %v1472_v30  ;;  %v1062_v36 = vmul.f32 1.442695, %v1031_v29 }
 0x2fa   : > { %1477 = vrcp.f32 %v1075_v31  ;;  %v1058_v37 = vmul.f32 1.442695, %v1029_v33 }
 0x2fb   : > { %1479 = vrcp.f32 %v1073_v34 }
 0x2fc   : > { %1481 = vpow2.f32 %v1060_v32 }
 0x2fd   : > { %1483 = vpow2.f32 %v1056_v35 }
 0x2fe   : > { %1485 = vpow2.f32 %v1062_v36 }
 0x2ff   : > { %1487 = vpow2.f32 %v1058_v37 }
 0x302   : > { %v1474_v4 = vpop.eup %1473 }
 0x303   : > { %v1476_v38 = vpop.eup %1475  ;;  %1123 = vst.msk [vmem:[%s1748_s14 + $0x50] sm:$0xff] %vm1112_vm0, %v1474_v4 }
 0x304   : > { %v1478_v39 = vpop.eup %1477  ;;  %1121 = vst.msk [vmem:[%s1748_s14 + $0x40] sm:$0xff] %vm1112_vm0, %v1476_v38 }
 0x305   : > { %v1480_v40 = vpop.eup %1479  ;;  %1124 = vst.msk [vmem:[%s1748_s14 + $0x58] sm:$0xff] %vm1112_vm0, %v1478_v39 }
 0x306   : > { %v1482_v41 = vpop.eup %1481  ;;  %1122 = vst.msk [vmem:[%s1748_s14 + $0x48] sm:$0xff] %vm1112_vm0, %v1480_v40 }
 0x307   : > { %v1484_v42 = vpop.eup %1483  ;;  %v1078_v43 = vadd.f32 1.0, %v1482_v41 }
 0x308   : > { %v1486_v44 = vpop.eup %1485  ;;  %v1076_v45 = vadd.f32 1.0, %v1484_v42 }
 0x309   : > { %v1488_v46 = vpop.eup %1487  ;;  %1489 = vrcp.f32 %v1078_v43  ;;  %v1079_v47 = vadd.f32 1.0, %v1486_v44 }
 0x30a   : > { %1491 = vrcp.f32 %v1076_v45  ;;  %v1077_v48 = vadd.f32 1.0, %v1488_v46 }
 0x30b   : > { %1493 = vrcp.f32 %v1079_v47 }
 0x30c   : > { %1495 = vrcp.f32 %v1077_v48 }
 0x313   : > { %v1490_v49 = vpop.eup %1489 }
 0x314   : > { %v1492_v50 = vpop.eup %1491  ;;  %1127 = vst.msk [vmem:[%s1748_s14 + $0x70] sm:$0xff] %vm1112_vm0, %v1490_v49 }
 0x315   : > { %v1494_v51 = vpop.eup %1493  ;;  %1125 = vst.msk [vmem:[%s1748_s14 + $0x60] sm:$0xff] %vm1112_vm0, %v1492_v50 }
 0x316   : > { %v1496_v52 = vpop.eup %1495  ;;  %1128 = vst.msk [vmem:[%s1748_s14 + $0x78] sm:$0xff] %vm1112_vm0, %v1494_v51 }
 0x317   : > { %1126 = vst.msk [vmem:[%s1748_s14 + $0x68] sm:$0xff] %vm1112_vm0, %v1496_v52 }
 0x318 PF: > { %s19_s26 = sadd.s32 1, %s1503_s26  }
 0x319   : > { %p16_p4 = scmp.ge.s32.totalorder %s19_s26, 4  }
 0x31b   :  { %18 = sbr.rel (!%p16_p4) target bundleno = 3 (0x3), region = 78 }

</bundles_post_ra>
